<compile_context>
chip_gen: v6e
topology: v6e:2x2x1
jax: 0.10.0
libtpu: 0.0.40
codegen_flags: <defaults>
</compile_context>

<pallas_src>
import functools

import jax
import jax.numpy as jnp
from jax.experimental import pallas as pl
from jax.experimental.pallas import tpu as pltpu


def _round_up(x, m):
    return (x + m - 1) // m * m


def _attention_head_kernel(x_ref, wt_ref, bw_ref, v_ref, o_ref, *, merge_seq):
    # x_ref : (TB, S, D)   TB batch rows per grid step, D unpadded
    # wt_ref: (D, Hp)      W weight in right-multiply form, H zero-padded to Hp
    # bw_ref: (1, Hp)      W bias (padded entries inert: v padding is zero)
    # v_ref : (1, Hp)      V weight (padded entries are exactly zero)
    # o_ref : (TB, D)      output block
    TB, S, D = x_ref.shape
    Hp = wt_ref.shape[1]

    x = x_ref[...]                       # load the feature tile once
    wt = wt_ref[...]
    bw = bw_ref[...]

    # att = tanh(features @ Wt + bW): the single big MXU matmul.
    if merge_seq:
        # S % 8 == 0 -> the (TB,S,D)->(TB*S,D) merge is layout-free.
        att = jnp.tanh(
            jnp.dot(x.reshape(TB * S, D), wt,
                    preferred_element_type=jnp.float32) + bw
        ).reshape(TB, S, Hp)                                  # (TB, S, Hp) f32
    else:
        # Avoid a hidden VMEM copy from a tile-crossing reshape: contract D
        # directly with both (TB, S) as free dims.
        att = jnp.tanh(
            jax.lax.dot_general(x, wt, (((2,), (0,)), ((), ())),
                                preferred_element_type=jnp.float32)
            + bw.reshape(1, 1, Hp)
        )                                                     # (TB, S, Hp) f32

    # score = V(att): VPU multiply + lane (XLU) reduce over Hp -> (TB, S).
    # (V bias omitted: softmax is shift-invariant.)
    score = jnp.sum(att * v_ref[...].astype(jnp.float32).reshape(1, 1, Hp),
                    axis=-1)                                  # (TB, S) f32

    # softmax over the sequence axis, max-stabilized, exact reciprocal.
    m = jnp.max(score, axis=-1, keepdims=True)
    e = jnp.exp(score - m)
    w = e / jnp.sum(e, axis=-1, keepdims=True)                # (TB, S) f32

    # context = sum_s(w * features): VPU multiply + sublane reduce over S.
    ctx = jnp.sum(w[:, :, None] * x, axis=1)                  # (TB, D) f32
    o_ref[...] = ctx.astype(o_ref.dtype)


@functools.partial(jax.jit, static_argnames=("block_b",))
def attention_head(features, w_weight, w_bias, v_weight, v_bias, *, block_b=256):
    """features: (B, S, D); W = Linear(D, H): weight (H, D), bias (H,);
    V = Linear(H, 1): weight (1, H), bias (1,).  Returns (B, D)."""
    del v_bias  # softmax is shift-invariant: V's bias cannot change the output
    B, S, D = features.shape
    H = w_weight.shape[0]
    Hp = _round_up(H, 128)

    # Batch tile selection.
    if B <= block_b:
        if B >= 16:
            # Keep >= 2 grid steps so the parallel axis can use both v7x TCs.
            TB = _round_up(pl.cdiv(B, 2), 8)
        else:
            TB = B                       # single full block (== full dim: legal)
    else:
        TB = max(8, (block_b // 8) * 8)  # ragged final block needs TB % 8 == 0
    grid = (pl.cdiv(B, TB),)

    # Only the tiny weight/bias tensors get padded (H -> Hp).  Zero V padding
    # makes the padded hidden columns contribute nothing to the score.
    wt_p = jnp.pad(w_weight.T, ((0, 0), (0, Hp - H)))               # (D, Hp)
    bw_p = jnp.pad(w_bias.reshape(1, H), ((0, 0), (0, Hp - H)))     # (1, Hp)
    v_p = jnp.pad(v_weight.reshape(1, H), ((0, 0), (0, Hp - H)))    # (1, Hp)

    # VMEM budget sized from the actual footprint (double-buffered blocks +
    # the f32 intermediates), with margin.  Default block_b keeps this well
    # inside v7x's 64 MiB; shrink block_b for very large S*D.
    x_item = jnp.dtype(features.dtype).itemsize
    est = (
        2 * TB * S * D * x_item          # double-buffered feature blocks
        + 2 * TB * D * x_item            # double-buffered output blocks
        + 2 * (D * Hp + 2 * Hp) * 4      # weight / bias blocks
        + TB * S * Hp * 4                # f32 att intermediate
        + TB * S * D * 4                 # f32 (w * x) product before reduce
    )
    vmem_limit = int(min(max(est * 3 // 2 + (2 << 20), 16 << 20), 100 << 20))

    kernel = functools.partial(_attention_head_kernel, merge_seq=(S % 8 == 0))

    # NOTE: whole S is kept resident per block; for very long sequences
    # (especially on v7x's 64 MiB VMEM) tile S with an online softmax instead.
    out = pl.pallas_call(
        kernel,
        out_shape=jax.ShapeDtypeStruct((B, D), features.dtype),
        grid_spec=pl.GridSpec(
            grid=grid,
            in_specs=[
                pl.BlockSpec((TB, S, D), lambda b: (b, 0, 0)),
                pl.BlockSpec((D, Hp), lambda b: (0, 0)),
                pl.BlockSpec((1, Hp), lambda b: (0, 0)),
                pl.BlockSpec((1, Hp), lambda b: (0, 0)),
            ],
            out_specs=pl.BlockSpec((TB, D), lambda b: (b, 0)),
        ),
        compiler_params=pltpu.CompilerParams(
            dimension_semantics=("parallel",),
            vmem_limit_bytes=vmem_limit,
        ),
    )(features, wt_p, bw_p, v_p)
    return out


def _reference(features, w_weight, w_bias, v_weight, v_bias):
    att = jnp.tanh(features @ w_weight.T + w_bias)           # (B, S, H)
    score = att @ v_weight.T + v_bias                        # (B, S, 1)
    w = jax.nn.softmax(score, axis=1)
    return jnp.sum(w * features, axis=1)                     # (B, D)


if __name__ == "__main__":
    # Small shapes consistent with the module's forward.  B=20 with block_b=256
    # exercises the "split into >=2 steps" path (TB=16) plus a ragged final
    # block of 4 rows; D=96 / H=48 are deliberately not multiples of 128 so the
    # unpadded-D path and the H->128 weight padding are exercised.
    B, S, D, H = 20, 8, 96, 48
    key = jax.random.PRNGKey(0)
    k1, k2, k3, k4, k5 = jax.random.split(key, 5)

    features = jax.random.normal(k1, (B, S, D), dtype=jnp.float32)
    w_weight = jax.random.normal(k2, (H, D), dtype=jnp.float32) * 0.1  # nn.Linear(D, H).weight
    w_bias = jax.random.normal(k3, (H,), dtype=jnp.float32) * 0.1      # nn.Linear(D, H).bias
    v_weight = jax.random.normal(k4, (1, H), dtype=jnp.float32) * 0.1  # nn.Linear(H, 1).weight
    v_bias = jax.random.normal(k5, (1,), dtype=jnp.float32) * 0.1      # nn.Linear(H, 1).bias

    out = attention_head(features, w_weight, w_bias, v_weight, v_bias, block_b=256)
    out = jax.block_until_ready(out)

    ref = _reference(features, w_weight, w_bias, v_weight, v_bias)
    assert out.shape == (B, D)
    assert jnp.allclose(out, ref, atol=1e-3, rtol=1e-3), float(jnp.max(jnp.abs(out - ref)))

    print("KERNEL_OK")
</pallas_src>

<mosaic_0001>
module attributes {stable_mosaic.version = 11 : i64} {
  func.func @_attention_head_kernel(%arg0: i32, %arg1: memref<16x8x96xf32, #tpu.memory_space<vmem>>, %arg2: memref<96x128xf32, #tpu.memory_space<vmem>>, %arg3: memref<1x128xf32, #tpu.memory_space<vmem>>, %arg4: memref<1x128xf32, #tpu.memory_space<vmem>>, %arg5: memref<16x96xf32, #tpu.memory_space<vmem>>) attributes {dimension_semantics = [#tpu.dimension_semantics<parallel>], iteration_bounds = array<i64: 2>, scalar_prefetch = 0 : i64, scratch_operands = 0 : i64, tpu.core_type = #tpu.core_type<tc>, window_params = [{transform_indices = @transform_0, window_bounds = array<i64: 16, 8, 96>}, {pipeline_mode = #tpu.pipeline_mode<synchronous>, transform_indices = @transform_1, window_bounds = array<i64: 96, 128>}, {pipeline_mode = #tpu.pipeline_mode<synchronous>, transform_indices = @transform_2, window_bounds = array<i64: 1, 128>}, {pipeline_mode = #tpu.pipeline_mode<synchronous>, transform_indices = @transform_3, window_bounds = array<i64: 1, 128>}, {transform_indices = @transform_4, window_bounds = array<i64: 16, 96>}]} {
    %c0 = arith.constant 0 : index
    %c0_0 = arith.constant 0 : index
    %c0_1 = arith.constant 0 : index
    %0 = vector.load %arg1[%c0, %c0_0, %c0_1] : memref<16x8x96xf32, #tpu.memory_space<vmem>>, vector<16x8x96xf32>
    %c0_2 = arith.constant 0 : index
    %c0_3 = arith.constant 0 : index
    %1 = vector.load %arg2[%c0_2, %c0_3] : memref<96x128xf32, #tpu.memory_space<vmem>>, vector<96x128xf32>
    %c0_4 = arith.constant 0 : index
    %c0_5 = arith.constant 0 : index
    %2 = vector.load %arg3[%c0_4, %c0_5] : memref<1x128xf32, #tpu.memory_space<vmem>>, vector<1x128xf32>
    %3 = vector.shape_cast %0 : vector<16x8x96xf32> to vector<128x96xf32>
    %cst = arith.constant dense<0.000000e+00> : vector<128x128xf32>
    %4 = tpu.matmul %3, %1, %cst {dimension_numbers = #tpu.dot_dimension_numbers<[1], [0], [0], [1], [0, 0, 1, 1], [], []>} : vector<128x96xf32>, vector<96x128xf32>, vector<128x128xf32> -> vector<128x128xf32>
    %5 = vector.broadcast %2 : vector<1x128xf32> to vector<128x128xf32>
    %6 = arith.addf %4, %5 : vector<128x128xf32>
    %7 = math.tanh %6 : vector<128x128xf32>
    %8 = vector.shape_cast %7 : vector<128x128xf32> to vector<16x8x128xf32>
    %c0_6 = arith.constant 0 : index
    %c0_7 = arith.constant 0 : index
    %9 = vector.load %arg4[%c0_6, %c0_7] : memref<1x128xf32, #tpu.memory_space<vmem>>, vector<1x128xf32>
    %10 = vector.shape_cast %9 : vector<1x128xf32> to vector<1x1x128xf32>
    %11 = vector.broadcast %10 : vector<1x1x128xf32> to vector<16x8x128xf32>
    %12 = arith.mulf %8, %11 : vector<16x8x128xf32>
    %cst_8 = arith.constant dense<0.000000e+00> : vector<16x8xf32>
    %13 = vector.multi_reduction <add>, %12, %cst_8 [2] : vector<16x8x128xf32> to vector<16x8xf32>
    %cst_9 = arith.constant dense<0xFF800000> : vector<16xf32>
    %14 = vector.multi_reduction <maximumf>, %13, %cst_9 [1] : vector<16x8xf32> to vector<16xf32>
    %15 = vector.shape_cast %14 : vector<16xf32> to vector<16x1xf32>
    %16 = vector.broadcast %15 : vector<16x1xf32> to vector<16x8xf32>
    %17 = arith.subf %13, %16 : vector<16x8xf32>
    %18 = math.exp %17 : vector<16x8xf32>
    %cst_10 = arith.constant dense<0.000000e+00> : vector<16xf32>
    %19 = vector.multi_reduction <add>, %18, %cst_10 [1] : vector<16x8xf32> to vector<16xf32>
    %20 = vector.shape_cast %19 : vector<16xf32> to vector<16x1xf32>
    %21 = vector.broadcast %20 : vector<16x1xf32> to vector<16x8xf32>
    %22 = arith.divf %18, %21 : vector<16x8xf32>
    %23 = vector.shape_cast %22 : vector<16x8xf32> to vector<16x8x1xf32>
    %24 = vector.broadcast %23 : vector<16x8x1xf32> to vector<16x8x96xf32>
    %25 = arith.mulf %24, %0 : vector<16x8x96xf32>
    %cst_11 = arith.constant dense<0.000000e+00> : vector<16x96xf32>
    %26 = vector.multi_reduction <add>, %25, %cst_11 [1] : vector<16x8x96xf32> to vector<16x96xf32>
    %c0_12 = arith.constant 0 : index
    %c0_13 = arith.constant 0 : index
    %27 = vector.load %arg5[%c0_12, %c0_13] : memref<16x96xf32, #tpu.memory_space<vmem>>, vector<16x96xf32>
    tpu.vector_store %arg5[%c0_12, %c0_13], %26 {strides = array<i32>} : memref<16x96xf32, #tpu.memory_space<vmem>>, vector<16x96xf32>,
    return
  }
  func.func @transform_0(%arg0: i32) -> (i32, i32, i32) {
    %c0_i32 = arith.constant 0 : i32
    %c0_i32_0 = arith.constant 0 : i32
    %c0_i32_1 = arith.constant 0 : i32
    return %arg0, %c0_i32, %c0_i32_0 : i32, i32, i32
  }
  func.func @transform_1(%arg0: i32) -> (i32, i32) {
    %c0_i32 = arith.constant 0 : i32
    %c0_i32_0 = arith.constant 0 : i32
    %c0_i32_1 = arith.constant 0 : i32
    return %c0_i32, %c0_i32_0 : i32, i32
  }
  func.func @transform_2(%arg0: i32) -> (i32, i32) {
    %c0_i32 = arith.constant 0 : i32
    %c0_i32_0 = arith.constant 0 : i32
    %c0_i32_1 = arith.constant 0 : i32
    return %c0_i32, %c0_i32_0 : i32, i32
  }
  func.func @transform_3(%arg0: i32) -> (i32, i32) {
    %c0_i32 = arith.constant 0 : i32
    %c0_i32_0 = arith.constant 0 : i32
    %c0_i32_1 = arith.constant 0 : i32
    return %c0_i32, %c0_i32_0 : i32, i32
  }
  func.func @transform_4(%arg0: i32) -> (i32, i32) {
    %c0_i32 = arith.constant 0 : i32
    %c0_i32_0 = arith.constant 0 : i32
    return %arg0, %c0_i32 : i32, i32
  }
}

</mosaic_0001>

<bundles_post_ra>
// kernel: attention_head.1
= control target key start
LH: loop header
LB: loop body
LE: loop exit
PB: predicated region body
PF: predicated region fallthrough
CT: control target
= control target key end

     0   :  { %9 = vsyncpa [#allocation3], 0  ;;  %s2296_s0 = inlined_call_operand.vmem [shape: f32[20,8,96], index: 0, kind: input, shape index: {}]   ;;  %s2297_s1 = inlined_call_operand.vmem [shape: f32[96,128], index: 1, kind: input, shape index: {}]   ;;  %s2298_s2 = inlined_call_operand.vmem [shape: f32[1,128], index: 2, kind: input, shape index: {}]   ;;  %s2299_s3 = inlined_call_operand.vmem [shape: f32[1,128], index: 3, kind: input, shape index: {}]   ;;  %s2300_s4 = inlined_call_operand.hbm [shape: f32[20,96], index: 4, kind: output, shape index: {}]  }
   0x1   :  { %11 = vsyncpa [#allocation3 + $0x1], 0  ;;  %s1718_s15 = smov 0   ;;  %s1720_s16 = smov 0  }
   0x2   :  { %s1722_s17 = smov 0   ;;  %s1724_s18 = smov 0  }
   0x3 LB: > { %s1739_s19 = sadd.s32 4294967295, %s1687_s18   ;;  %s1353_s20 = sadd.s32 4294967294, %s1687_s18   ;;  %s1687_s18 = sphi %s1724_s18, %s2306_s18   ;;  %s1683_s17 = sphi %s1722_s17, %s2305_s17   ;;  %s1679_s16 = sphi %s1720_s16, %s2304_s16   ;;  %s1675_s15 = sphi %s1718_s15, %s2303_s15  }
   0x4   : > { %s1743_s21 = sadd.s32 1, %s1687_s18   ;;  %s113_s22 = sadd.s32 1, %s1683_s17 }
   0x5   : > { %s110_s23 = ssub.s32 %s1687_s18, %s1743_s21  ;;  %p123_p0 = scmp.ne.s32.totalorder %s1683_s17, %s1679_s16 }
   0x6   : > { %p111_p1 = scmp.eq.s32.totalorder %s110_s23, 0  ;;  %p124_p2 = scmp.eq.s32.totalorder %s1739_s19, 1 }
   0x7   : > { %p129_p3 = scmp.ne.s32.totalorder %s1679_s16, %s1675_s15  ;;  %p130_p4 = scmp.eq.s32.totalorder %s1353_s20, 1 }
   0x8   : > { %s1754_s24 = scalar_select %p111_p1, %s1683_s17, %s113_s22  }
   0x9   : > { %p1756_p5 = por %p124_p2, %p123_p0  ;;  %p1760_p6 = por %p130_p4, %p129_p3 }
   0xa   : > { %p1356_p7 = scmp.ge.s32.totalorder %s1687_s18, 1  ;;  %p174_p8 = scmp.lt.s32.totalorder %s1687_s18, 3 }
   0xc   : > { %p175_p9 = pnand %p1356_p7, %p174_p8 }
   0xd   : > { %s1358_s9 = sshll.u32 (!%p175_p9), %s1739_s19, 4  ;;  %s201_s23 = sand.u32 (!%p175_p9), 1, %s1679_s16  }
   0xe   : > { %178 = sbr.rel (%p175_p9) target bundleno = 1106 (0x452), region = 36  ;;  %p209_p10 = scmp.lt.s32.totalorder (!%p175_p9), %s1358_s9, 19 }
   0xf   : > { %s1357_s27 = sshll.u32 (!%p175_p9), %s201_s23, 4  ;;  %s2237_s29 = scalar_lea.sflag (!%p175_p9), [#allocation3], %s201_s23 }
  0x10   : > { %s203_s28 = scalar_lea.vmem (!%p175_p9), [#allocation2], %s1357_s27 }
  0x13   : > { %v250_v0 = vld [vmem:[%s2297_s1 + $0x58] sm:$0xff]  ;;  %v249_v1 = vld [vmem:[%s2297_s1 + $0x50] sm:$0xff]  ;;  %v248_v2 = vld [vmem:[%s2297_s1 + $0x48] sm:$0xff]  ;;  %s2308_s9 = smov (!%p209_p10, %s1358_s9), 19  ;;  %vm258_vm0 = vcmask 785408   ;;  %vm605_vm1 = vcmask 1041409  }
  0x14   : > { %1416 = vmatprep.subr.mxu0 %v250_v0  ;;  %1464 = vmatprep.subr.mxu1 %v250_v0  ;;  %v247_v3 = vld [vmem:[%s2297_s1 + $0x40] sm:$0xff]  ;;  %v246_v4 = vld [vmem:[%s2297_s1 + $0x38] sm:$0xff]  ;;  %v245_v5 = vld [vmem:[%s2297_s1 + $0x30] sm:$0xff]  ;;  %s1359_s5 = sshll.u32 %s2308_s9, 3  ;;  %vm607_vm2 = vcmask 1042434   ;;  %vm609_vm3 = vcmask 1043459  }
  0x15   : > { %1417 = vmatpush3.msra.mxu0 %v250_v0  ;;  %1476 = vmatpush3.msra.mxu1 %v250_v0  ;;  %v244_v6 = vld [vmem:[%s2297_s1 + $0x28] sm:$0xff]  ;;  %v243_v7 = vld [vmem:[%s2297_s1 + $0x20] sm:$0xff]  ;;  %v242_v8 = vld [vmem:[%s2297_s1 + $0x18] sm:$0xff]  ;;  %s1803_s11 = scalar_lea.vmem %s2296_s0, %s1359_s5  ;;  %vm611_vm4 = vcmask 1044484   ;;  %vm613_vm5 = vcmask 1045509   ;;  %vm615_vm6 = vcmask 1046534  }
  0x16   : > { %1418 = vmatprep.subr.mxu0 %v249_v1  ;;  %1465 = vmatprep.subr.mxu1 %v249_v1  ;;  %v241_v9 = vld [vmem:[%s2297_s1 + $0x10] sm:$0xff]  ;;  %v240_v10 = vld [vmem:[%s2297_s1 + $0x8] sm:$0xff]  ;;  %v239_v11 = vld [vmem:[%s2297_s1] sm:$0xff]  ;;  %vm617_vm7 = vcmask 1047559   ;;  %vm628_vm8 = vcmask 64512   ;;  %s1379_s30 = sshll.u32 (%p1756_p5), %s1739_s19, 1 }
  0x17   : > { %1419 = vmatpush3.msra.mxu0 %v249_v1  ;;  %1477 = vmatpush3.msra.mxu1 %v249_v1  ;;  %v1809_v12 = vld [vmem:[%s1803_s11] sm:$0xff]  ;;  %v1815_v14 = vld [vmem:[%s1803_s11 + $0x8] sm:$0xff]  ;;  %v1821_v16 = vld [vmem:[%s1803_s11 + $0x10] sm:$0xff]  ;;  %s1280_s5 = ssub.s32 (%p1756_p5), 3, %s1379_s30 }
  0x18   : > { %1420 = vmatprep.subr.mxu0 %v248_v2  ;;  %1466 = vmatprep.subr.mxu1 %v248_v2  ;;  %v1812_v13 = vld [vmem:[%s1803_s11 + $0x40] sm:$0xff]  ;;  %v1818_v15 = vld [vmem:[%s1803_s11 + $0x48] sm:$0xff]  ;;  %v1824_v17 = vld [vmem:[%s1803_s11 + $0x50] sm:$0xff]  ;;  %p1281_p11 = scmp.lt.s32.totalorder (%p1756_p5), %s1280_s5, 2 }
  0x19   : > { %1421 = vmatpush3.msra.mxu0 %v248_v2  ;;  %1478 = vmatpush3.msra.mxu1 %v248_v2  ;;  %v1837_v18 = vld [vmem:[%s1803_s11 + $0x18] sm:$0xff]  ;;  %v1845_v20 = vld [vmem:[%s1803_s11 + $0x20] sm:$0xff]  ;;  %v1857_v22 = vld [vmem:[%s1803_s11 + $0x28] sm:$0xff] }
  0x1a   : > { %1422 = vmatprep.subr.mxu0 %v247_v3  ;;  %1467 = vmatprep.subr.mxu1 %v247_v3  ;;  %v1842_v19 = vld [vmem:[%s1803_s11 + $0x58] sm:$0xff]  ;;  %v1848_v21 = vld [vmem:[%s1803_s11 + $0x60] sm:$0xff]  ;;  %v1862_v23 = vld [vmem:[%s1803_s11 + $0x68] sm:$0xff] }
  0x1b   : > { %1423 = vmatpush3.msra.mxu0 %v247_v3  ;;  %1479 = vmatpush3.msra.mxu1 %v247_v3  ;;  %v1865_v24 = vld [vmem:[%s1803_s11 + $0x30] sm:$0xff]  ;;  %v1877_v26 = vld [vmem:[%s1803_s11 + $0x38] sm:$0xff]  ;;  %v1891_v28 = vld [vmem:[%s2298_s2] ss:$0 sm:$0xff] }
  0x1c   : > { %1424 = vmatprep.subr.mxu0 %v246_v4  ;;  %1468 = vmatprep.subr.mxu1 %v246_v4  ;;  %v1868_v25 = vld [vmem:[%s1803_s11 + $0x70] sm:$0xff]  ;;  %v1882_v27 = vld [vmem:[%s1803_s11 + $0x78] sm:$0xff]  ;;  %v1906_v52 = vld [vmem:[%s2299_s3] ss:$0 sm:$0xff] }
  0x1d   : > { %1425 = vmatpush3.msra.mxu0 %v246_v4  ;;  %1480 = vmatpush3.msra.mxu1 %v246_v4 }
  0x1e   : > { %1426 = vmatprep.subr.mxu0 %v245_v5  ;;  %1469 = vmatprep.subr.mxu1 %v245_v5 }
  0x1f   : > { %1427 = vmatpush3.msra.mxu0 %v245_v5  ;;  %1481 = vmatpush3.msra.mxu1 %v245_v5 }
  0x20   : > { %1428 = vmatprep.subr.mxu0 %v244_v6  ;;  %1470 = vmatprep.subr.mxu1 %v244_v6 }
  0x21   : > { %1429 = vmatpush3.msra.mxu0 %v244_v6  ;;  %1482 = vmatpush3.msra.mxu1 %v244_v6 }
  0x22   : > { %1430 = vmatprep.subr.mxu0 %v243_v7  ;;  %1471 = vmatprep.subr.mxu1 %v243_v7 }
  0x23   : > { %1431 = vmatpush3.msra.mxu0 %v243_v7  ;;  %1483 = vmatpush3.msra.mxu1 %v243_v7 }
  0x24   : > { %1432 = vmatprep.subr.mxu0 %v242_v8  ;;  %1472 = vmatprep.subr.mxu1 %v242_v8 }
  0x25   : > { %1433 = vmatpush3.msra.mxu0 %v242_v8  ;;  %1484 = vmatpush3.msra.mxu1 %v242_v8 }
  0x26   : > { %1434 = vmatprep.subr.mxu0 %v241_v9  ;;  %1473 = vmatprep.subr.mxu1 %v241_v9 }
  0x27   : > { %1435 = vmatpush3.msra.mxu0 %v241_v9  ;;  %1485 = vmatpush3.msra.mxu1 %v241_v9 }
  0x28   : > { %1436 = vmatprep.subr.mxu0 %v240_v10  ;;  %1474 = vmatprep.subr.mxu1 %v240_v10 }
  0x29   : > { %1437 = vmatpush3.msra.mxu0 %v240_v10  ;;  %1486 = vmatpush3.msra.mxu1 %v240_v10 }
  0x2a   : > { %1438 = vmatprep.subr.mxu0 %v239_v11  ;;  %1475 = vmatprep.subr.mxu1 %v239_v11 }
  0x2b   : > { %1439 = vmatpush3.msra.mxu0 %v239_v11  ;;  %1487 = vmatpush3.msra.mxu1 %v239_v11 }
  0x2c   : > { %1440 = vmatprep.mubr.msk.f32.mxu0 %vm258_vm0, %v1809_v12  ;;  %1452 = vmatprep.mubr.msk.f32.mxu1 %vm258_vm0, %v1812_v13 }
  0x2d   : > { %1441 = vmatmul.mubr.msk.f32.vlgmr.msra.gmra.mxu0 %vm258_vm0, %v1815_v14  ;;  %1453 = vmatmul.mubr.msk.f32.vlgmr.msra.gmra.mxu1 %vm258_vm0, %v1818_v15 }
  0x2e   : > { %1443 = vmatprep.mubr.msk.f32.mxu0 %vm258_vm0, %v1821_v16  ;;  %1455 = vmatprep.mubr.msk.f32.mxu1 %vm258_vm0, %v1824_v17 }
  0x31   : > { %1444 = vmatmul.mubr.msk.f32.gmra.mxu0 %vm258_vm0, %v1837_v18  ;;  %1456 = vmatmul.mubr.msk.f32.gmra.mxu1 %vm258_vm0, %v1842_v19 }
  0x32   : > { %1446 = vmatprep.mubr.msk.f32.mxu0 %vm258_vm0, %v1845_v20  ;;  %1458 = vmatprep.mubr.msk.f32.mxu1 %vm258_vm0, %v1848_v21 }
  0x35   : > { %1447 = vmatmul.mubr.msk.f32.gmra.mxu0 %vm258_vm0, %v1857_v22  ;;  %1459 = vmatmul.mubr.msk.f32.gmra.mxu1 %vm258_vm0, %v1862_v23 }
  0x36   : > { %1449 = vmatprep.mubr.msk.f32.mxu0 %vm258_vm0, %v1865_v24  ;;  %1461 = vmatprep.mubr.msk.f32.mxu1 %vm258_vm0, %v1868_v25 }
  0x39   : > { %1450 = vmatmul.mubr.msk.f32.gmra.mxu0 %vm258_vm0, %v1877_v26  ;;  %1462 = vmatmul.mubr.msk.f32.gmra.mxu1 %vm258_vm0, %v1882_v27 }
  0xed   : > { %v1442_v29 = vpop.f32.mrf.mxu0  ;;  %v1454_v30 = vpop.f32.mrf.mxu1 }
  0xee   : > { %v379_v31 = vadd.f32 %v1442_v29, %v1891_v28  ;;  %v419_v32 = vadd.f32 %v1454_v30, %v1891_v28 }
  0xef   : > { %v373_v33 = vpop.f32.mrf.mxu0  ;;  %v413_v34 = vpop.f32.mrf.mxu1 }
  0xf0   : > { %1531 = vtanh.f32 %v379_v31  ;;  %v374_v35 = vadd.f32 %v1891_v28, %v373_v33  ;;  %v414_v36 = vadd.f32 %v1891_v28, %v413_v34 }
  0xf1   : > { %1533 = vtanh.f32 %v419_v32  ;;  %v1445_v37 = vpop.f32.mrf.mxu0  ;;  %v1457_v38 = vpop.f32.mrf.mxu1 }
  0xf2   : > { %1535 = vtanh.f32 %v374_v35  ;;  %v389_v39 = vadd.f32 %v1445_v37, %v1891_v28  ;;  %v429_v40 = vadd.f32 %v1457_v38, %v1891_v28 }
  0xf3   : > { %1537 = vtanh.f32 %v414_v36  ;;  %v383_v41 = vpop.f32.mrf.mxu0  ;;  %v423_v42 = vpop.f32.mrf.mxu1 }
  0xf4   : > { %1539 = vtanh.f32 %v389_v39  ;;  %v424_v43 = vadd.f32 %v1891_v28, %v423_v42  ;;  %v384_v46 = vadd.f32 %v1891_v28, %v383_v41 }
  0xf5   : > { %1541 = vtanh.f32 %v429_v40  ;;  %v1448_v44 = vpop.f32.mrf.mxu0  ;;  %v1460_v45 = vpop.f32.mrf.mxu1 }
  0xf6   : > { %v399_v48 = vadd.f32 %v1448_v44, %v1891_v28  ;;  %1543 = vtanh.f32 %v424_v43  ;;  %v439_v50 = vadd.f32 %v1460_v45, %v1891_v28 }
  0xf7   : > { %v433_v47 = vpop.f32.mrf.mxu1  ;;  %v393_v49 = vpop.f32.mrf.mxu0  ;;  %1545 = vtanh.f32 %v384_v46 }
  0xf8   : > { %1547 = vtanh.f32 %v399_v48  ;;  %v434_v55 = vadd.f32 %v1891_v28, %v433_v47  ;;  %v394_v57 = vadd.f32 %v1891_v28, %v393_v49 }
  0xf9   : > { %v1463_v51 = vpop.f32.mrf.mxu1  ;;  %v1451_v53 = vpop.f32.mrf.mxu0  ;;  %1549 = vtanh.f32 %v439_v50  ;;  %v539_v50 = vlaneseq }
  0xfa   : > { %1551 = vtanh.f32 %v434_v55  ;;  %v409_v9 = vadd.f32 %v1451_v53, %v1891_v28  ;;  %v449_v11 = vadd.f32 %v1463_v51, %v1891_v28 }
  0xfb   : > { %v443_v59 = vpop.f32.mrf.mxu1  ;;  %v403_v62 = vpop.f32.mrf.mxu0  ;;  %1553 = vtanh.f32 %v394_v57  ;;  %v1942_v55 = vshrl.u32 %v539_v50, 7 }
  0xfc   : > { %v444_v2 = vadd.f32 %v1891_v28, %v443_v59  ;;  %v404_v4 = vadd.f32 %v1891_v28, %v403_v62 }
  0xfd   : > { %v1532_v54 = vpop.eup %1531 }
  0xfe   : > { %v1534_v56 = vpop.eup %1533  ;;  %v476_v58 = vmul.f32 %v1532_v54, %v1906_v52  ;;  %1555 = vtanh.f32 %v444_v2  ;;  %v540_v54 = vand.u32 127, %v539_v50 }
  0xff   : > { %v1536_v60 = vpop.eup %1535  ;;  %v484_v61 = vmul.f32 %v1534_v56, %v1906_v52  ;;  %1557 = vtanh.f32 %v404_v4 }
 0x100   : > { %v1538_v63 = vpop.eup %1537  ;;  %493 = vadd.xlane.f32.xlu0 %v476_v58  ;;  %v475_v5 = vmul.f32 %v1536_v60, %v1906_v52  ;;  %1559 = vtanh.f32 %v409_v9  ;;  %v1949_v57 = vsub.s32 %v540_v54, %v1942_v55 }
 0x101   : > { %v1540_v0 = vpop.eup %1539  ;;  %509 = vadd.xlane.f32.xlu1 %v484_v61  ;;  %v483_v1 = vmul.f32 %v1538_v63, %v1906_v52  ;;  %1561 = vtanh.f32 %v449_v11 }
 0x102   : > { %v1542_v3 = vpop.eup %1541  ;;  %v478_v6 = vmul.f32 %v1540_v0, %v1906_v52 }
 0x103   : > { %v486_v7 = vmul.f32 %v1542_v3, %v1906_v52  ;;  %v1544_v8 = vpop.eup %1543 }
 0x104   : > { %491 = vadd.xlane.f32.xlu0 %v475_v5  ;;  %v1546_v10 = vpop.eup %1545  ;;  %v485_v30 = vmul.f32 %v1544_v8, %v1906_v52 }
 0x105   : > { %507 = vadd.xlane.f32.xlu1 %v483_v1  ;;  %v1548_v29 = vpop.eup %1547  ;;  %v477_v32 = vmul.f32 %v1546_v10, %v1906_v52 }
 0x106   : > { %v1550_v31 = vpop.eup %1549  ;;  %v480_v33 = vmul.f32 %v1548_v29, %v1906_v52 }
 0x107   : > { %v488_v34 = vmul.f32 %v1550_v31, %v1906_v52  ;;  %v1552_v35 = vpop.eup %1551 }
 0x108   : > { %497 = vadd.xlane.f32.xlu0 %v478_v6  ;;  %v1554_v36 = vpop.eup %1553  ;;  %v487_v28 = vmul.f32 %v1552_v35, %v1906_v52 }
 0x109   : > { %513 = vadd.xlane.f32.xlu1 %v486_v7  ;;  %v479_v38 = vmul.f32 %v1554_v36, %v1906_v52 }
 0x10b   : > { %v1556_v37 = vpop.eup %1555 }
 0x10c   : > { %495 = vadd.xlane.f32.xlu0 %v477_v32  ;;  %v1558_v39 = vpop.eup %1557  ;;  %v489_v40 = vmul.f32 %v1556_v37, %v1906_v52 }
 0x10d   : > { %511 = vadd.xlane.f32.xlu1 %v485_v30  ;;  %v481_v41 = vmul.f32 %v1558_v39, %v1906_v52  ;;  %v1560_v42 = vpop.eup %1559 }
 0x10e   : > { %v1562_v43 = vpop.eup %1561  ;;  %v482_v44 = vmul.f32 %v1560_v42, %v1906_v52 }
 0x10f   : > { %v490_v45 = vmul.f32 %v1562_v43, %v1906_v52 }
 0x110   : > { %501 = vadd.xlane.f32.xlu0 %v480_v33 }
 0x111   : > { %517 = vadd.xlane.f32.xlu1 %v488_v34 }
 0x114   : > { %499 = vadd.xlane.f32.xlu0 %v479_v38 }
 0x115   : > { %515 = vadd.xlane.f32.xlu1 %v487_v28 }
 0x118   : > { %503 = vadd.xlane.f32.xlu0 %v481_v41 }
 0x119   : > { %519 = vadd.xlane.f32.xlu1 %v489_v40 }
 0x11c   : > { %505 = vadd.xlane.f32.xlu0 %v482_v44 }
 0x11d   : > { %521 = vadd.xlane.f32.xlu1 %v490_v45 }
 0x189   : > { %v1930_v46 = vpop.xlane.xlu0 %493 }
 0x18a   : > { %v1932_v47 = vpop.xlane.xlu1 %509  ;;  %v548_v0 = vrot.slane %v1930_v46, %v1949_v57 }
 0x18b   : > { %v580_v61 = vrot.slane %v1932_v47, %v1949_v57 }
 0x18d   : > { %v1934_v48 = vpop.xlane.xlu0 %491 }
 0x18e   : > { %v1936_v49 = vpop.xlane.xlu1 %507  ;;  %v544_v59 = vrot.slane %v1934_v48, %v1949_v57 }
 0x18f   : > { %v576_v62 = vrot.slane %v1936_v49, %v1949_v57 }
 0x190   : > { %v606_v3 = vsel %vm605_vm1, %v548_v0, %v544_v59  ;;  %v2010_v0 = vsub.s32 1, %v1942_v55 }
 0x191   : > { %v1938_v51 = vpop.xlane.xlu0 %497  ;;  %v619_v5 = vsel %vm605_vm1, %v580_v61, %v576_v62  ;;  %v1689_v62 = vmov 0  }
 0x192   : > { %v1940_v53 = vpop.xlane.xlu1 %513  ;;  %v556_v9 = vrot.slane %v1938_v51, %v1949_v57  ;;  %1530 = vset.pattern.permute.xlu1 %v1689_v62  ;;  %1529 = vset.pattern.permute.xlu0 %v1689_v62 }
 0x193   : > { %v588_v6 = vrot.slane %v1940_v53, %v1949_v57 }
 0x195   : > { %v1944_v56 = vpop.xlane.xlu0 %495 }
 0x196   : > { %v1946_v52 = vpop.xlane.xlu1 %511  ;;  %v552_v63 = vrot.slane %v1944_v56, %v1949_v57 }
 0x197   : > { %v584_v1 = vrot.slane %v1946_v52, %v1949_v57 }
 0x198   : > { %v608_v7 = vsel %vm607_vm2, %v552_v63, %v606_v3  ;;  %v2007_v63 = vsub.s32 0, %v1942_v55  ;;  %v2015_v3 = vsub.s32 4, %v1942_v55 }
 0x199   : > { %v1951_v58 = vpop.xlane.xlu0 %501  ;;  %v620_v10 = vsel %vm607_vm2, %v584_v1, %v619_v5  ;;  %v610_v30 = vsel %vm609_vm3, %v556_v9, %v608_v7 }
 0x19a   : > { %v1955_v60 = vpop.xlane.xlu1 %517  ;;  %v621_v33 = vsel %vm609_vm3, %v588_v6, %v620_v10  ;;  %v564_v36 = vrot.slane %v1951_v58, %v1949_v57 }
 0x19b   : > { %v596_v32 = vrot.slane %v1955_v60, %v1949_v57 }
 0x19d   : > { %v1967_v2 = vpop.xlane.xlu0 %499 }
 0x19e   : > { %v516_v4 = vpop.xlane.xlu1 %515  ;;  %v560_v8 = vrot.slane %v1967_v2, %v1949_v57 }
 0x19f   : > { %v592_v11 = vrot.slane %v516_v4, %v1949_v57 }
 0x1a0   : > { %v612_v34 = vsel %vm611_vm4, %v560_v8, %v610_v30  ;;  %v2022_v8 = vsub.s32 5, %v1942_v55 }
 0x1a1   : > { %v1980_v29 = vpop.xlane.xlu0 %503  ;;  %v622_v28 = vsel %vm611_vm4, %v592_v11, %v621_v33  ;;  %v614_v41 = vsel %vm613_vm5, %v564_v36, %v612_v34  ;;  %v2033_v36 = vsub.s32 2, %v1942_v55 }
 0x1a2   : > { %v520_v31 = vpop.xlane.xlu1 %519  ;;  %v568_v35 = vrot.slane %v1980_v29, %v1949_v57  ;;  %v623_v43 = vsel %vm613_vm5, %v596_v32, %v622_v28  ;;  %v2029_v32 = vsub.s32 6, %v1942_v55 }
 0x1a3   : > { %v600_v37 = vrot.slane %v520_v31, %v1949_v57 }
 0x1a4   : > { %v616_v44 = vsel %vm615_vm6, %v568_v35, %v614_v41  ;;  %v2038_v41 = vsub.s32 7, %v1942_v55 }
 0x1a5   : > { %v1993_v38 = vpop.xlane.xlu0 %505  ;;  %v624_v45 = vsel %vm615_vm6, %v600_v37, %v623_v43 }
 0x1a6   : > { %v522_v39 = vpop.xlane.xlu1 %521  ;;  %v572_v40 = vrot.slane %v1993_v38, %v1949_v57 }
 0x1a7   : > { %v604_v42 = vrot.slane %v522_v39, %v1949_v57 }
 0x1a8   : > { %v618_v50 = vsel %vm617_vm7, %v572_v40, %v616_v44 }
 0x1a9   : > { %v625_v54 = vsel %vm617_vm7, %v604_v42, %v624_v45  ;;  %v629_v59 = vsel %vm628_vm8, %v618_v50, -inf  ;;  %v2046_v45 = vsub.s32 3, %v1942_v55 }
 0x1aa   : > { %v632_v61 = vsel %vm628_vm8, %v625_v54, -inf  ;;  %630 = vmax.xlane.f32.xlu0 %v629_v59 }
 0x1ab   : > { %633 = vmax.xlane.f32.xlu1 %v632_v61 }
 0x233   : > { %v2012_v1 = vpop.xlane.xlu0 %630 }
 0x234   : > { %v634_v5 = vpop.xlane.xlu1 %633  ;;  %v640_v6 = vrot.slane %v2012_v1, %v2007_v63  ;;  %v644_v7 = vrot.slane %v2012_v1, %v2010_v0  ;;  %v648_v44 = vrot.slane %v2012_v1, %v2033_v36  ;;  %v652_v55 = vrot.slane %v2012_v1, %v2046_v45 }
 0x235   : > { %v688_v9 = vrot.slane %v634_v5, %v2015_v3  ;;  %v672_v10 = vrot.slane %v634_v5, %v2007_v63  ;;  %v692_v33 = vrot.slane %v634_v5, %v2022_v8  ;;  %v676_v28 = vrot.slane %v634_v5, %v2010_v0 }
 0x236   : > { %v717_v11 = vsub.f32 %v1934_v48, %v640_v6  ;;  %v718_v30 = vsub.f32 %v1930_v46, %v644_v7  ;;  %v696_v46 = vrot.slane %v634_v5, %v2029_v32  ;;  %v680_v59 = vrot.slane %v634_v5, %v2033_v36 }
 0x237   : > { %v729_v34 = vsub.f32 %v516_v4, %v688_v9  ;;  %v725_v37 = vsub.f32 %v1936_v49, %v672_v10  ;;  %v730_v48 = vsub.f32 %v1955_v60, %v692_v33  ;;  %v726_v4 = vsub.f32 %v1932_v47, %v676_v28 }
 0x238   : > { %v733_v35 = vmul.f32 1.442695, %v717_v11  ;;  %v735_v40 = vmul.f32 1.442695, %v718_v30  ;;  %v700_v49 = vrot.slane %v634_v5, %v2038_v41  ;;  %v731_v50 = vsub.f32 %v520_v31, %v696_v46 }
 0x239   : > { %v757_v42 = vmul.f32 1.442695, %v729_v34  ;;  %v749_v43 = vmul.f32 1.442695, %v725_v37  ;;  %v759_v54 = vmul.f32 1.442695, %v730_v48  ;;  %v719_v61 = vsub.f32 %v1944_v56, %v648_v44 }
 0x23a   : > { %1563 = vpow2.f32 %v733_v35  ;;  %v751_v60 = vmul.f32 1.442695, %v726_v4  ;;  %v732_v47 = vsub.f32 %v522_v39, %v700_v49  ;;  %v761_v62 = vmul.f32 1.442695, %v731_v50 }
 0x23b   : > { %1565 = vpow2.f32 %v735_v40  ;;  %v727_v6 = vsub.f32 %v1946_v52, %v680_v59  ;;  %v737_v7 = vmul.f32 1.442695, %v719_v61  ;;  %v684_v10 = vrot.slane %v634_v5, %v2046_v45 }
 0x23c   : > { %1567 = vpow2.f32 %v757_v42  ;;  %v763_v31 = vmul.f32 1.442695, %v732_v47  ;;  %v720_v30 = vsub.f32 %v1938_v51, %v652_v55  ;;  %v656_v33 = vrot.slane %v2012_v1, %v2015_v3 }
 0x23d   : > { %1569 = vpow2.f32 %v749_v43  ;;  %v753_v11 = vmul.f32 1.442695, %v727_v6  ;;  %v728_v39 = vsub.f32 %v1940_v53, %v684_v10  ;;  %v660_v28 = vrot.slane %v2012_v1, %v2022_v8 }
 0x23e   : > { %1571 = vpow2.f32 %v759_v54  ;;  %v739_v5 = vmul.f32 1.442695, %v720_v30  ;;  %v721_v37 = vsub.f32 %v1967_v2, %v656_v33  ;;  %v664_v46 = vrot.slane %v2012_v1, %v2029_v32 }
 0x23f   : > { %1573 = vpow2.f32 %v751_v60  ;;  %v755_v35 = vmul.f32 1.442695, %v728_v39  ;;  %v722_v48 = vsub.f32 %v1951_v58, %v660_v28  ;;  %v668_v43 = vrot.slane %v2012_v1, %v2038_v41 }
 0x240   : > { %1575 = vpow2.f32 %v761_v62  ;;  %v741_v42 = vmul.f32 1.442695, %v721_v37  ;;  %v723_v44 = vsub.f32 %v1980_v29, %v664_v46 }
 0x241   : > { %1577 = vpow2.f32 %v737_v7  ;;  %v743_v49 = vmul.f32 1.442695, %v722_v48  ;;  %v724_v58 = vsub.f32 %v1993_v38, %v668_v43 }
 0x242   : > { %1579 = vpow2.f32 %v763_v31  ;;  %v745_v54 = vmul.f32 1.442695, %v723_v44 }
 0x243   : > { %1581 = vpow2.f32 %v753_v11  ;;  %v747_v1 = vmul.f32 1.442695, %v724_v58 }
 0x244   : > { %1583 = vpow2.f32 %v739_v5 }
 0x245   : > { %1585 = vpow2.f32 %v755_v35 }
 0x246   : > { %1587 = vpow2.f32 %v741_v42 }
 0x247   : > { %v2054_v9 = vpop.eup %1563  ;;  %1589 = vpow2.f32 %v743_v49 }
 0x248   : > { %v2058_v56 = vpop.eup %1565  ;;  %782 = vperm.xlu0 %1529, %v2054_v9   ;;  %1591 = vpow2.f32 %v745_v54 }
 0x249   : > { %785 = vperm.xlu1 %1530, %v2058_v56   ;;  %v2062_v52 = vpop.eup %1567  ;;  %1593 = vpow2.f32 %v747_v1 }
 0x24a   : > { %v2067_v34 = vpop.eup %1569 }
 0x24b   : > { %v2071_v51 = vpop.eup %1571 }
 0x24c   : > { %818 = vperm.xlu0 %1529, %v2062_v52   ;;  %v2076_v53 = vpop.eup %1573 }
 0x24d   : > { %806 = vperm.xlu1 %1530, %v2067_v34   ;;  %v2080_v40 = vpop.eup %1575 }
 0x24e   : > { %v2085_v4 = vpop.eup %1577 }
 0x24f   : > { %v2089_v2 = vpop.eup %1579 }
 0x250   : > { %821 = vperm.xlu0 %1529, %v2071_v51   ;;  %v2094_v50 = vpop.eup %1581 }
 0x251   : > { %809 = vperm.xlu1 %1530, %v2076_v53   ;;  %v2099_v59 = vpop.eup %1583 }
 0x252   : > { %v2102_v60 = vpop.eup %1585 }
 0x253   : > { %v2105_v29 = vpop.eup %1587 }
 0x254   : > { %824 = vperm.xlu0 %1529, %v2080_v40   ;;  %v2108_v61 = vpop.eup %1589 }
 0x255   : > { %788 = vperm.xlu1 %1530, %v2085_v4   ;;  %v2111_v38 = vpop.eup %1591 }
 0x256   : > { %v2114_v47 = vpop.eup %1593 }
 0x258   : > { %827 = vperm.xlu0 %1529, %v2089_v2  }
 0x259   : > { %812 = vperm.xlu1 %1530, %v2094_v50  }
 0x25d   : > { %791 = vperm.xlu1 %1530, %v2099_v59  }
 0x261   : > { %815 = vperm.xlu1 %1530, %v2102_v60  }
 0x265   : > { %794 = vperm.xlu1 %1530, %v2105_v29  }
 0x269   : > { %797 = vperm.xlu1 %1530, %v2108_v61  }
 0x26d   : > { %800 = vperm.xlu1 %1530, %v2111_v38  }
 0x271   : > { %803 = vperm.xlu1 %1530, %v2114_v47  }
 0x2c3   : > { %v783_v6 = vpop.permute.xlu0 %782 }
 0x2c4   : > { %v786_v62 = vpop.permute.xlu1 %785 }
 0x2c7   : > { %v819_v7 = vpop.permute.xlu0 %818 }
 0x2c8   : > { %v807_v55 = vpop.permute.xlu1 %806  ;;  %v880_v42 = vrot.slane %v819_v7, %v1949_v57 }
 0x2c9   : > { %v864_v28 = vrot.slane %v807_v55, %v1949_v57 }
 0x2cb   : > { %v822_v11 = vpop.permute.xlu0 %821 }
 0x2cc   : > { %v810_v31 = vpop.permute.xlu1 %809  ;;  %v884_v49 = vrot.slane %v822_v11, %v1949_v57  ;;  %v836_v11 = vrot.slane %v786_v62, %v1949_v57 }
 0x2cd   : > { %v868_v5 = vrot.slane %v810_v31, %v1949_v57 }
 0x2cf   : > { %v825_v39 = vpop.permute.xlu0 %824  ;;  %v900_v46 = vsel %vm605_vm1, %v868_v5, %v864_v28 }
 0x2d0   : > { %v789_v10 = vpop.permute.xlu1 %788  ;;  %v888_v54 = vrot.slane %v825_v39, %v1949_v57 }
 0x2d1   : > { %v840_v39 = vrot.slane %v789_v10, %v1949_v57 }
 0x2d3   : > { %v828_v44 = vpop.permute.xlu0 %827 }
 0x2d4   : > { %v813_v30 = vpop.permute.xlu1 %812  ;;  %v892_v55 = vrot.slane %v828_v44, %v1949_v57 }
 0x2d5   : > { %v872_v35 = vrot.slane %v813_v30, %v1949_v57 }
 0x2d7   : > { %v901_v43 = vsel %vm607_vm2, %v872_v35, %v900_v46 }
 0x2d8   : > { %v792_v33 = vpop.permute.xlu1 %791 }
 0x2d9   : > { %v844_v46 = vrot.slane %v792_v33, %v1949_v57 }
 0x2dc   : > { %v816_v37 = vpop.permute.xlu1 %815 }
 0x2dd   : > { %v876_v48 = vrot.slane %v816_v37, %v1949_v57  ;;  %v832_v37 = vrot.slane %v783_v6, %v1949_v57 }
 0x2df   : > { %v902_v58 = vsel %vm609_vm3, %v876_v48, %v901_v43  ;;  %v893_v43 = vsel %vm605_vm1, %v836_v11, %v832_v37 }
 0x2e0   : > { %v903_v1 = vsel %vm611_vm4, %v880_v42, %v902_v58  ;;  %v795_v31 = vpop.permute.xlu1 %794 }
 0x2e1   : > { %v904_v30 = vsel %vm613_vm5, %v884_v49, %v903_v1  ;;  %v848_v48 = vrot.slane %v795_v31, %v1949_v57  ;;  %v894_v49 = vsel %vm607_vm2, %v840_v39, %v893_v43 }
 0x2e2   : > { %v905_v5 = vsel %vm615_vm6, %v888_v54, %v904_v30  ;;  %v895_v62 = vsel %vm609_vm3, %v844_v46, %v894_v49 }
 0x2e3   : > { %v906_v7 = vsel %vm617_vm7, %v892_v55, %v905_v5  ;;  %v896_v6 = vsel %vm611_vm4, %v848_v48, %v895_v62 }
 0x2e4   : > { %v798_v28 = vpop.permute.xlu1 %797  ;;  %v912_v35 = vsel %vm628_vm8, %v906_v7, 0.0 }
 0x2e5   : > { %913 = vadd.xlane.f32.xlu0 %v912_v35  ;;  %v852_v44 = vrot.slane %v798_v28, %v1949_v57 }
 0x2e7   : > { %v897_v10 = vsel %vm613_vm5, %v852_v44, %v896_v6 }
 0x2e8   : > { %v801_v42 = vpop.permute.xlu1 %800 }
 0x2e9   : > { %v856_v58 = vrot.slane %v801_v42, %v1949_v57 }
 0x2eb   : > { %v898_v1 = vsel %vm615_vm6, %v856_v58, %v897_v10 }
 0x2ec   : > { %v804_v54 = vpop.permute.xlu1 %803 }
 0x2ed   : > { %v860_v33 = vrot.slane %v804_v54, %v1949_v57 }
 0x2ef   : > { %v899_v31 = vsel %vm617_vm7, %v860_v33, %v898_v1 }
 0x2f0   : > { %v909_v55 = vsel %vm628_vm8, %v899_v31, 0.0 }
 0x2f1   : > { %910 = vadd.xlane.f32.xlu1 %v909_v55 }
 0x36e   : > { %v914_v30 = vpop.xlane.xlu0 %913 }
 0x36f   : > { %v952_v35 = vrot.slane %v914_v30, %v2007_v63  ;;  %v956_v11 = vrot.slane %v914_v30, %v2010_v0  ;;  %v960_v37 = vrot.slane %v914_v30, %v2033_v36  ;;  %v964_v46 = vrot.slane %v914_v30, %v2046_v45 }
 0x370   : > { %v972_v58 = vrot.slane %v914_v30, %v2022_v8  ;;  %v976_v54 = vrot.slane %v914_v30, %v2029_v32  ;;  %v980_v1 = vrot.slane %v914_v30, %v2038_v41 }
 0x37a   : > { %v911_v5 = vpop.xlane.xlu1 %910 }
 0x37b   : > { %v924_v7 = vrot.slane %v911_v5, %v2010_v0  ;;  %v920_v28 = vrot.slane %v911_v5, %v2007_v63  ;;  %v928_v57 = vrot.slane %v911_v5, %v2033_v36  ;;  %v932_v39 = vrot.slane %v911_v5, %v2046_v45 }
 0x37c   : > { %v936_v48 = vrot.slane %v911_v5, %v2015_v3  ;;  %v968_v63 = vrot.slane %v914_v30, %v2015_v3  ;;  %v940_v44 = vrot.slane %v911_v5, %v2022_v8  ;;  %v944_v3 = vrot.slane %v911_v5, %v2029_v32 }
 0x37d   : > { %1595 = vrcp.f32 %v924_v7  ;;  %v948_v8 = vrot.slane %v911_v5, %v2038_v41 }
 0x37e   : > { %1597 = vrcp.f32 %v920_v28 }
 0x37f   : > { %1599 = vrcp.f32 %v952_v35 }
 0x380   : > { %1601 = vrcp.f32 %v956_v11 }
 0x381   : > { %1603 = vrcp.f32 %v928_v57 }
 0x382   : > { %1605 = vrcp.f32 %v960_v37 }
 0x383   : > { %1607 = vrcp.f32 %v932_v39 }
 0x384   : > { %1609 = vrcp.f32 %v964_v46 }
 0x385   : > { %1611 = vrcp.f32 %v936_v48 }
 0x386   : > { %1613 = vrcp.f32 %v968_v63 }
 0x387   : > { %1615 = vrcp.f32 %v940_v44 }
 0x388   : > { %1617 = vrcp.f32 %v972_v58 }
 0x389   : > { %1619 = vrcp.f32 %v944_v3 }
 0x38a   : > { %v1596_v0 = vpop.eup %1595  ;;  %1621 = vrcp.f32 %v976_v54 }
 0x38b   : > { %v1598_v42 = vpop.eup %1597  ;;  %v1000_v43 = vmul.f32 %v1596_v0, %v2058_v56  ;;  %1623 = vrcp.f32 %v948_v8 }
 0x38c   : > { %v1600_v36 = vpop.eup %1599  ;;  %v998_v49 = vmul.f32 %v1598_v42, %v2054_v9  ;;  %1625 = vrcp.f32 %v980_v1 }
 0x38d   : > { %v1602_v45 = vpop.eup %1601  ;;  %1036 = vperm.xlu1 %1530, %v1000_v43   ;;  %v1014_v62 = vmul.f32 %v1600_v36, %v2067_v34 }
 0x38e   : > { %1031 = vperm.xlu0 %1529, %v998_v49   ;;  %v1604_v6 = vpop.eup %1603  ;;  %v1016_v56 = vmul.f32 %v1602_v45, %v2076_v53 }
 0x38f   : > { %v1606_v10 = vpop.eup %1605  ;;  %v1002_v9 = vmul.f32 %v1604_v6, %v2085_v4 }
 0x390   : > { %v1608_v33 = vpop.eup %1607  ;;  %v1018_v34 = vmul.f32 %v1606_v10, %v2094_v50 }
 0x391   : > { %1071 = vperm.xlu1 %1530, %v1014_v62   ;;  %v1610_v31 = vpop.eup %1609  ;;  %v1004_v53 = vmul.f32 %v1608_v33, %v2099_v59 }
 0x392   : > { %1076 = vperm.xlu0 %1529, %v1016_v56   ;;  %v1612_v32 = vpop.eup %1611  ;;  %v1020_v55 = vmul.f32 %v1610_v31, %v2102_v60 }
 0x393   : > { %v1614_v4 = vpop.eup %1613  ;;  %v1006_v5 = vmul.f32 %v1612_v32, %v2105_v29 }
 0x394   : > { %v1616_v7 = vpop.eup %1615  ;;  %v1022_v50 = vmul.f32 %v1614_v4, %v2062_v52 }
 0x395   : > { %1041 = vperm.xlu1 %1530, %v1002_v9   ;;  %v1618_v28 = vpop.eup %1617  ;;  %v1008_v41 = vmul.f32 %v1616_v7, %v2108_v61 }
 0x396   : > { %1081 = vperm.xlu0 %1529, %v1018_v34   ;;  %v1620_v59 = vpop.eup %1619  ;;  %v1024_v30 = vmul.f32 %v1618_v28, %v2071_v51 }
 0x397   : > { %v1622_v35 = vpop.eup %1621  ;;  %v1010_v60 = vmul.f32 %v1620_v59, %v2111_v38 }
 0x398   : > { %v1624_v11 = vpop.eup %1623  ;;  %v1026_v29 = vmul.f32 %v1622_v35, %v2080_v40 }
 0x399   : > { %1046 = vperm.xlu1 %1530, %v1004_v53   ;;  %v1626_v57 = vpop.eup %1625  ;;  %v1012_v52 = vmul.f32 %v1624_v11, %v2114_v47 }
 0x39a   : > { %1086 = vperm.xlu0 %1529, %v1020_v55   ;;  %v1028_v37 = vmul.f32 %v1626_v57, %v2089_v2 }
 0x39d   : > { %1051 = vperm.xlu1 %1530, %v1006_v5  }
 0x39e   : > { %1091 = vperm.xlu0 %1529, %v1022_v50  }
 0x3a1   : > { %1056 = vperm.xlu1 %1530, %v1008_v41  }
 0x3a2   : > { %1096 = vperm.xlu0 %1529, %v1024_v30  }
 0x3a5   : > { %1061 = vperm.xlu1 %1530, %v1010_v60  }
 0x3a6   : > { %1101 = vperm.xlu0 %1529, %v1026_v29  }
 0x3a9   : > { %1066 = vperm.xlu1 %1530, %v1012_v52  }
 0x3aa   : > { %1106 = vperm.xlu0 %1529, %v1028_v37  }
 0x408   : > { %v1037_v61 = vpop.permute.xlu1 %1036 }
 0x409   : > { %v1110_v51 = vmul.f32 %v1037_v61, %v1815_v14  ;;  %v1032_v39 = vpop.permute.xlu0 %1031 }
 0x40a   : > { %v1109_v46 = vmul.f32 %v1032_v39, %v1809_v12 }
 0x40b   : > { %v1132_v38 = vsel %vm258_vm0, %v1110_v51, 0.0 }
 0x40c   : > { %v1133_v48 = vrot.slane %v1132_v38, 4  ;;  %v1125_v40 = vsel %vm258_vm0, %v1109_v46, 0.0  ;;  %v1072_v63 = vpop.permute.xlu1 %1071 }
 0x40d   : > { %v1126_v0 = vrot.slane %v1125_v40, 4  ;;  %v1117_v47 = vmul.f32 %v1072_v63, %v1812_v13  ;;  %v1077_v42 = vpop.permute.xlu0 %1076 }
 0x40e   : > { %v1134_v2 = vadd.f32 %v1133_v48, %v1132_v38  ;;  %v1118_v43 = vmul.f32 %v1077_v42, %v1818_v15 }
 0x40f   : > { %v1127_v44 = vadd.f32 %v1126_v0, %v1125_v40  ;;  %v1181_v36 = vsel %vm258_vm0, %v1117_v47, 0.0 }
 0x410   : > { %v1135_v14 = vrot.slane %v1134_v2, 2  ;;  %v1182_v49 = vrot.slane %v1181_v36, 4  ;;  %v1188_v12 = vsel %vm258_vm0, %v1118_v43, 0.0  ;;  %v1042_v58 = vpop.permute.xlu1 %1041 }
 0x411   : > { %v1128_v45 = vrot.slane %v1127_v44, 2  ;;  %v1189_v62 = vrot.slane %v1188_v12, 4  ;;  %v1111_v3 = vmul.f32 %v1042_v58, %v1821_v16  ;;  %v1082_v6 = vpop.permute.xlu0 %1081 }
 0x412   : > { %v1183_v56 = vadd.f32 %v1182_v49, %v1181_v36  ;;  %v1119_v13 = vmul.f32 %v1082_v6, %v1824_v17  ;;  %v1136_v54 = vadd.f32 %v1135_v14, %v1134_v2 }
 0x413   : > { %v1129_v10 = vadd.f32 %v1128_v45, %v1127_v44  ;;  %v1190_v9 = vadd.f32 %v1189_v62, %v1188_v12  ;;  %v1139_v15 = vsel %vm258_vm0, %v1111_v3, 0.0 }
 0x414   : > { %v1047_v8 = vpop.permute.xlu1 %1046  ;;  %v1184_v1 = vrot.slane %v1183_v56, 2  ;;  %v1195_v31 = vsel %vm258_vm0, %v1119_v13, 0.0  ;;  %v1140_v32 = vrot.slane %v1139_v15, 4  ;;  %v1137_v55 = vrot.slane %v1136_v54, 1 }
 0x415   : > { %v1112_v33 = vmul.f32 %v1047_v8, %v1837_v18  ;;  %v1087_v34 = vpop.permute.xlu0 %1086  ;;  %v1130_v4 = vrot.slane %v1129_v10, 1  ;;  %v1191_v17 = vrot.slane %v1190_v9, 2  ;;  %v1196_v50 = vrot.slane %v1195_v31, 4 }
 0x416   : > { %v1120_v53 = vmul.f32 %v1087_v34, %v1842_v19  ;;  %v1185_v18 = vadd.f32 %v1184_v1, %v1183_v56  ;;  %v1141_v35 = vadd.f32 %v1140_v32, %v1139_v15  ;;  %v1138_v19 = vadd.f32 %v1137_v55, %v1136_v54 }
 0x417   : > { %v1146_v16 = vsel %vm258_vm0, %v1112_v33, 0.0  ;;  %v1131_v11 = vadd.f32 %v1130_v4, %v1129_v10  ;;  %v1192_v29 = vadd.f32 %v1191_v17, %v1190_v9  ;;  %v1197_v37 = vadd.f32 %v1196_v50, %v1195_v31 }
 0x418   : > { %v1202_v5 = vsel %vm258_vm0, %v1120_v53, 0.0  ;;  %v1052_v7 = vpop.permute.xlu1 %1051  ;;  %v1147_v28 = vrot.slane %v1146_v16, 4  ;;  %v1186_v38 = vrot.slane %v1185_v18, 1 }
 0x419   : > { %v1203_v41 = vrot.slane %v1202_v5, 4  ;;  %v1092_v59 = vpop.permute.xlu0 %1091  ;;  %v1113_v30 = vmul.f32 %v1052_v7, %v1845_v20  ;;  %v1142_v20 = vrot.slane %v1141_v35, 2  ;;  %v1193_v47 = vrot.slane %v1192_v29, 1 }
 0x41a   : > { %v1121_v60 = vmul.f32 %v1092_v59, %v1848_v21  ;;  %v1148_v61 = vadd.f32 %v1147_v28, %v1146_v16  ;;  %v2204_v21 = vsel %vm605_vm1, %v1138_v19, %v1131_v11  ;;  %v1198_v44 = vrot.slane %v1197_v37, 2 }
 0x41b   : > { %v1153_v57 = vsel %vm258_vm0, %v1113_v30, 0.0  ;;  %v1204_v51 = vadd.f32 %v1203_v41, %v1202_v5  ;;  %v1187_v58 = vadd.f32 %v1186_v38, %v1185_v18  ;;  %v1143_v3 = vadd.f32 %v1142_v20, %v1141_v35 }
 0x41c   : > { %v1057_v52 = vpop.permute.xlu1 %1056  ;;  %v1154_v39 = vrot.slane %v1153_v57, 4  ;;  %v1209_v48 = vsel %vm258_vm0, %v1121_v60, 0.0  ;;  %v1149_v36 = vrot.slane %v1148_v61, 2  ;;  %v1194_v54 = vadd.f32 %v1193_v47, %v1192_v29 }
 0x41d   : > { %v1097_v46 = vpop.permute.xlu0 %1096  ;;  %v1114_v40 = vmul.f32 %v1057_v52, %v1857_v22  ;;  %v1210_v0 = vrot.slane %v1209_v48, 4  ;;  %v1205_v14 = vrot.slane %v1204_v51, 2  ;;  %v1199_v8 = vadd.f32 %v1198_v44, %v1197_v37 }
 0x41e   : > { %v1155_v63 = vadd.f32 %v1154_v39, %v1153_v57  ;;  %v1122_v2 = vmul.f32 %v1097_v46, %v1862_v23  ;;  %v1150_v33 = vadd.f32 %v1149_v36, %v1148_v61  ;;  %v1144_v41 = vrot.slane %v1143_v3, 1 }
 0x41f   : > { %v1160_v42 = vsel %vm258_vm0, %v1114_v40, 0.0  ;;  %v1211_v49 = vadd.f32 %v1210_v0, %v1209_v48  ;;  %v1206_v34 = vadd.f32 %v1205_v14, %v1204_v51  ;;  %v1200_v59 = vrot.slane %v1199_v8, 1 }
 0x420   : > { %v1062_v43 = vpop.permute.xlu1 %1061  ;;  %v1161_v45 = vrot.slane %v1160_v42, 4  ;;  %v1216_v22 = vsel %vm258_vm0, %v1122_v2, 0.0  ;;  %v1156_v6 = vrot.slane %v1155_v63, 2  ;;  %v1151_v35 = vrot.slane %v1150_v33, 1 }
 0x421   : > { %v1102_v12 = vpop.permute.xlu0 %1101  ;;  %v1115_v62 = vmul.f32 %v1062_v43, %v1865_v24  ;;  %v1212_v56 = vrot.slane %v1211_v49, 2  ;;  %v1217_v13 = vrot.slane %v1216_v22, 4  ;;  %v1145_v46 = vadd.f32 %v1144_v41, %v1143_v3 }
 0x422   : > { %v1162_v10 = vadd.f32 %v1161_v45, %v1160_v42  ;;  %v1123_v9 = vmul.f32 %v1102_v12, %v1868_v25  ;;  %v1157_v55 = vadd.f32 %v1156_v6, %v1155_v63  ;;  %v1201_v40 = vadd.f32 %v1200_v59, %v1199_v8 }
 0x423   : > { %v1167_v23 = vsel %vm258_vm0, %v1115_v62, 0.0  ;;  %v1218_v1 = vadd.f32 %v1217_v13, %v1216_v22  ;;  %v1213_v4 = vadd.f32 %v1212_v56, %v1211_v49  ;;  %v1152_v20 = vadd.f32 %v1151_v35, %v1150_v33 }
 0x424   : > { %v1067_v15 = vpop.permute.xlu1 %1066  ;;  %v1163_v53 = vrot.slane %v1162_v10, 2  ;;  %v1168_v32 = vrot.slane %v1167_v23, 4  ;;  %v1223_v24 = vsel %vm258_vm0, %v1123_v9, 0.0  ;;  %v1158_v29 = vrot.slane %v1157_v55, 1 }
 0x425   : > { %v1107_v31 = vpop.permute.xlu0 %1106  ;;  %v1116_v16 = vmul.f32 %v1067_v15, %v1877_v26  ;;  %v1219_v17 = vrot.slane %v1218_v1, 2  ;;  %v1224_v5 = vrot.slane %v1223_v24, 4  ;;  %v1207_v26 = vrot.slane %v1206_v34, 1 }
 0x426   : > { %v1164_v7 = vadd.f32 %v1163_v53, %v1162_v10  ;;  %v1169_v50 = vadd.f32 %v1168_v32, %v1167_v23  ;;  %v1124_v28 = vmul.f32 %v1107_v31, %v1882_v27  ;;  %v1214_v37 = vrot.slane %v1213_v4, 1 }
 0x427   : > { %v1174_v25 = vsel %vm258_vm0, %v1116_v16, 0.0  ;;  %v1220_v18 = vadd.f32 %v1219_v17, %v1218_v1  ;;  %v1225_v30 = vadd.f32 %v1224_v5, %v1223_v24  ;;  %v1208_v47 = vadd.f32 %v1207_v26, %v1206_v34 }
 0x428   : > { %v1170_v60 = vrot.slane %v1169_v50, 2  ;;  %v1175_v19 = vrot.slane %v1174_v25, 4  ;;  %v1230_v11 = vsel %vm258_vm0, %v1124_v28, 0.0  ;;  %v1165_v61 = vrot.slane %v1164_v7, 1 }
 0x429   : > { %v1226_v57 = vrot.slane %v1225_v30, 2  ;;  %v1231_v52 = vrot.slane %v1230_v11, 4  ;;  %v1221_v38 = vrot.slane %v1220_v18, 1  ;;  %v1159_v42 = vadd.f32 %v1158_v29, %v1157_v55 }
 0x42a   : > { %v1171_v51 = vadd.f32 %v1170_v60, %v1169_v50  ;;  %v1176_v39 = vadd.f32 %v1175_v19, %v1174_v25  ;;  %v1260_v44 = vsel %vm605_vm1, %v1194_v54, %v1187_v58  ;;  %v1215_v36 = vadd.f32 %v1214_v37, %v1213_v4 }
 0x42b   : > { %v1227_v27 = vadd.f32 %v1226_v57, %v1225_v30  ;;  %v1232_v48 = vadd.f32 %v1231_v52, %v1230_v11  ;;  %v1166_v14 = vadd.f32 %v1165_v61, %v1164_v7  ;;  %v1254_v12 = vsel %vm607_vm2, %v1145_v46, %v2204_v21 }
 0x42c   : > { %v1172_v63 = vrot.slane %v1171_v51, 1  ;;  %v1177_v0 = vrot.slane %v1176_v39, 2  ;;  %v1222_v45 = vadd.f32 %v1221_v38, %v1220_v18  ;;  %v1261_v3 = vsel %vm607_vm2, %v1201_v40, %v1260_v44 }
 0x42d   : > { %v1228_v2 = vrot.slane %v1227_v27, 1  ;;  %v1233_v43 = vrot.slane %v1232_v48, 2  ;;  %v1255_v6 = vsel %vm609_vm3, %v1152_v20, %v1254_v12  ;;  %v1262_v58 = vsel %vm609_vm3, %v1208_v47, %v1261_v3 }
 0x42e   : > { %v1178_v49 = vadd.f32 %v1177_v0, %v1176_v39  ;;  %v1173_v22 = vadd.f32 %v1172_v63, %v1171_v51  ;;  %v1256_v54 = vsel %vm611_vm4, %v1159_v42, %v1255_v6  ;;  %v1263_v23 = vsel %vm611_vm4, %v1215_v36, %v1262_v58 }
 0x42f   : > { %v1234_v62 = vadd.f32 %v1233_v43, %v1232_v48  ;;  %v1229_v56 = vadd.f32 %v1228_v2, %v1227_v27  ;;  %v1257_v21 = vsel %vm613_vm5, %v1166_v14, %v1256_v54  ;;  %v1264_v15 = vsel %vm613_vm5, %v1222_v45, %v1263_v23 }
 0x430   : > { %v1179_v13 = vrot.slane %v1178_v49, 1  ;;  %v1258_v8 = vsel %vm615_vm6, %v1173_v22, %v1257_v21 }
 0x431   : > { %v1235_v10 = vrot.slane %v1234_v62, 1  ;;  %v1265_v34 = vsel %vm615_vm6, %v1229_v56, %v1264_v15 }
 0x432   : > { %v1180_v9 = vadd.f32 %v1179_v13, %v1178_v49  ;;  %1278 = sbr.rel (!%p1756_p5) target bundleno = 1106 (0x452), region = 40 }
 0x433   : > { %v1236_v33 = vadd.f32 %v1235_v10, %v1234_v62 }
 0x434   : > { %v1259_v1 = vsel %vm617_vm7, %v1180_v9, %v1258_v8 }
 0x435   : > { %1269 = vst.msk [vmem:[%s203_s28] sm:$0xff] %vm258_vm0, %v1259_v1  ;;  %v1266_v31 = vsel %vm617_vm7, %v1236_v33, %v1265_v34 }
 0x436   : > { %1270 = vst.msk [vmem:[%s203_s28 + $0x8] sm:$0xff] %vm258_vm0, %v1266_v31 }
 0x437   : > { %s2310_s5 = smov (!%p1281_p11, %s1280_s5), 2 }
 0x438   : > { %s2242_s6 = sshll.u32 %s2310_s5, 7 }
 0x439   : > { %s1285_s7 = ssub.s32 256, %s2242_s6 }
 0x43a   : > { %1286 = vsyncadd %s2237_s29, %s1285_s7  ;;  %p1381_p12 = scmp.ne.s32.totalorder %s2242_s6, 0  ;;  %s1387_s8 = sshll.u32 %s1739_s19, 8 }
 0x43b   : > { %s2251_s11 = scalar_lea.hbm %s2300_s4, %s1387_s8  ;;  %s1291_s9 = sshll.u32 %s203_s28, 4  ;;  %s2253_s9 = int_to_ptr.vmem [resolvable:$true] %s1291_s9 }
 0x43c   : > { %s1627_s12 = scalar_lea.vmem %s2253_s9, %s2242_s6  ;;  %s1690_s13 = smov [#allocation2]  }
 0x43d   : > { %p1628_p13 = scmp.ne.s32.totalorder %s2253_s9, %s1627_s12  ;;  %s1631_s14 = sshll.u32 %s1690_s13, 4  ;;  %s1632_s14 = int_to_ptr.vmem [resolvable:$false] %s1631_s14 }
 0x43e   : > { %s1633_s19 = scalar_lea.vmem %s1632_s14, 512  ;;  %p1634_p2 = scmp.lt.s32.totalorder %s2253_s9, %s1632_s14 }
 0x43f   : > { %p1629_p0 = pnand %p1628_p13, %p1381_p12  ;;  %p1635_p3 = scmp.lt.s32.totalorder %s1633_s19, %s1627_s12 }
 0x441   : > { %p1630_p1 = pneg %p1629_p0  ;;  %p1636_p4 = por %p1635_p3, %p1634_p2 }
 0x443   : > { %p1637_p5 = pnand %p1636_p4, %p1630_p1 }
 0x445   : > { %1640 = shalt.err (!%p1637_p5)
}
 0x446   : > { %s1641_s20 = scalar_lea.hbm %s2251_s11, %s2242_s6  ;;  %s1645_s27 = scalar_lea.hbm %s2300_s4, 384 }
 0x447   : > { %p1642_p7 = scmp.ne.s32.totalorder %s2251_s11, %s1641_s20  ;;  %p1646_p10 = scmp.lt.s32.totalorder %s2251_s11, %s2300_s4 }
 0x448   : > { %p1647_p11 = scmp.lt.s32.totalorder %s1645_s27, %s1641_s20 }
 0x449   : > { %p1643_p8 = pnand %p1642_p7, %p1381_p12 }
 0x44a   : > { %p1648_p13 = por %p1647_p11, %p1646_p10 }
 0x44b   : > { %p1644_p9 = pneg %p1643_p8 }
 0x44d   : > { %p1649_p0 = pnand %p1648_p13, %p1644_p9 }
 0x44f   : > { %1652 = shalt.err (!%p1649_p0)
}
 0x450   : > { %s1691_s5 = smov 128   ;;  %s1692_s7 = smov 8  }
 0x451   : > { %1297 = dma.vmem_to_hbm [thread:$0]  (%p1381_p12), %s2253_s9, %s2242_s6, %s2251_s11, %s2237_s29, %s1691_s5, %s1691_s5, %s1692_s7  }
 0x452 PF: > { %p1493_p1 = scmp.ge.s32.totalorder %s1687_s18, 2  ;;  %s1306_s8 = sand.u32 1, %s1675_s15  }
 0x453   : > { %s1307_s10 = scalar_lea.sflag [#allocation3], %s1306_s8 }
 0x454   : > { %p1490_p2 = pnand %p1493_p1, %p1760_p6 }
 0x456   : > { %p1491_p3 = pneg %p1490_p2 }
 0x458   : > { %1670 = dma.done.wait (%p1491_p3), %s1307_s10, 256  }
 0x459   : > { %1672 = vsyncadd (%p1491_p3), %s1307_s10, 4294967040  ;;  %p14_p4 = scmp.ge.s32.totalorder %s1743_s21, 4   ;;  %s2303_s15 = smov %s1679_s16 }
 0x45a   : > { %s2304_s16 = smov %s1683_s17  ;;  %s2305_s17 = smov %s1754_s24 }
 0x45b   : > { %s2306_s18 = smov %s1743_s21  ;;  %16 = sbr.rel (!%p14_p4) target bundleno = 3 (0x3), region = 71 }
 0x460   :  { %1312 = vsyncpa [#allocation3], 1 }
 0x461   :  { %1314 = vsyncpa [#allocation3 + $0x1], 1 }

</bundles_post_ra>
